<compile_context>
chip_gen: v7x
topology: tpu7x:2x2x1
jax: 0.10.0
libtpu: 0.0.40
codegen_flags: <defaults>
</compile_context>

<pallas_src>
import functools
import math

import jax
import jax.numpy as jnp
from jax.experimental import pallas as pl
from jax.experimental.pallas import tpu as pltpu

LN_EPS = 1e-5


def _layernorm(x, w, b):
    # PyTorch LayerNorm: biased variance over last dim, eps=1e-5.
    mean = jnp.mean(x, axis=-1, keepdims=True)
    var = jnp.mean((x - mean) ** 2, axis=-1, keepdims=True)
    return (x - mean) * jax.lax.rsqrt(var + LN_EPS) * w + b


def attention_block_kernel(
    x_ref,          # (Rt, E)  activations (Rt = bt * S rows)
    wqkv_ref,       # (E, 3E)  pre-transposed in_proj weight, Q cols pre-scaled
    bqkv_ref,       # (1, 3E)  in_proj bias (Q part pre-scaled), f32
    wo_ref,         # (E, E)   pre-transposed out_proj weight
    bo_ref,         # (1, E)
    ln1w_ref,       # (1, E)
    ln1b_ref,       # (1, E)
    ln2w_ref,       # (1, E)
    ln2b_ref,       # (1, E)
    w1_ref,         # (E, 4E)  pre-transposed ff[0].weight
    b1_ref,         # (1, 4E)
    w2_ref,         # (4E, E)  pre-transposed ff[2].weight
    b2_ref,         # (1, E)
    out_ref,        # (Rt, E)
    *,
    num_heads: int,
    seq_len: int,
    dense_attention: bool,
    ffn_chunk_cols,
    approx_recip: bool,
):
    R, E = x_ref.shape
    S = seq_len
    Bt = R // S
    H = num_heads
    Dh = E // H
    mm = wqkv_ref.dtype                       # bf16 (default) or f32

    x = x_ref[...].astype(jnp.float32)        # (R, E)

    # ---- Fused QKV projection: one MXU matmul, N = 3E.
    #      (1/sqrt(Dh) already folded into the Q columns/bias on the host.)
    qkv = (jnp.dot(x.astype(mm), wqkv_ref[...],
                   preferred_element_type=jnp.float32)
           + bqkv_ref[...].astype(jnp.float32))                # (R, 3E)
    q = qkv[:, :E]
    k = qkv[:, E:2 * E]
    v = qkv[:, 2 * E:]

    use_dense = dense_attention or (Bt == 1)

    # Block-diagonal additive mask (shared across heads): each query row only
    # attends to keys from its own batch element.
    if use_dense and Bt > 1:
        rb = jax.lax.broadcasted_iota(jnp.int32, (R, R), 0) // S
        cb = jax.lax.broadcasted_iota(jnp.int32, (R, R), 1) // S
        neg_mask = jnp.where(rb == cb, 0.0, -1e30).astype(jnp.float32)
    else:
        neg_mask = None

    def attend(qh, kh, vh):
        # qh/kh/vh: (R, Dh) f32; softmax scale already folded into Q.
        if use_dense:
            s = jnp.dot(qh.astype(mm), kh.astype(mm).T,
                        preferred_element_type=jnp.float32)      # (R, R)
            if neg_mask is not None:
                s = s + neg_mask
            s = s - jnp.max(s, axis=-1, keepdims=True)
            p = jnp.exp(s)
            denom = jnp.sum(p, axis=-1, keepdims=True)
            p = p * pl.reciprocal(denom, approx=approx_recip)
            return jnp.dot(p.astype(mm), vh.astype(mm),
                           preferred_element_type=jnp.float32)   # (R, Dh)
        # Per-batch einsum path (used when S is large): split the leading
        # (sublane) axis only — no lane relayout.
        q3 = qh.reshape(Bt, S, Dh)
        k3 = kh.reshape(Bt, S, Dh)
        v3 = vh.reshape(Bt, S, Dh)
        s = jnp.einsum('bqd,bkd->bqk', q3.astype(mm), k3.astype(mm),
                       preferred_element_type=jnp.float32)
        s = s - jnp.max(s, axis=-1, keepdims=True)
        p = jnp.exp(s)
        denom = jnp.sum(p, axis=-1, keepdims=True)
        p = p * pl.reciprocal(denom, approx=approx_recip)
        ctx3 = jnp.einsum('bqk,bkd->bqd', p.astype(mm), v3.astype(mm),
                          preferred_element_type=jnp.float32)
        return ctx3.reshape(R, Dh)

    if H == 1:
        ctx = attend(q, k, v)
    else:
        # Heads sliced out of the lane dim — no transposes.
        parts = []
        for h in range(H):
            lo, hi = h * Dh, (h + 1) * Dh
            parts.append(attend(q[:, lo:hi], k[:, lo:hi], v[:, lo:hi]))
        ctx = jnp.concatenate(parts, axis=-1)                    # (R, E)

    # ---- Output projection
    attn_out = (jnp.dot(ctx.astype(mm), wo_ref[...],
                        preferred_element_type=jnp.float32)
                + bo_ref[...].astype(jnp.float32))

    # ---- Residual + LayerNorm 1
    h1 = _layernorm(x + attn_out, ln1w_ref[...], ln1b_ref[...])
    h1_mm = h1.astype(mm)

    # ---- Feed-forward: Linear(E,4E) -> ReLU -> Linear(4E,E), hidden-dim
    #      chunked so the full (R, 4E) f32 intermediate never materializes.
    F4 = w1_ref.shape[1]
    if ffn_chunk_cols is None or ffn_chunk_cols >= F4:
        C = F4
    else:
        C = int(ffn_chunk_cols)
    ff = jnp.zeros((R, E), jnp.float32)
    for c0 in range(0, F4, C):
        c1 = min(c0 + C, F4)
        hc = (jnp.dot(h1_mm, w1_ref[:, c0:c1],
                      preferred_element_type=jnp.float32)
              + b1_ref[:, c0:c1].astype(jnp.float32))
        hc = jnp.maximum(hc, 0.0)
        ff = ff + jnp.dot(hc.astype(mm), w2_ref[c0:c1, :],
                          preferred_element_type=jnp.float32)
    ff = ff + b2_ref[...].astype(jnp.float32)

    # ---- Residual + LayerNorm 2
    out = _layernorm(h1 + ff, ln2w_ref[...], ln2b_ref[...])
    out_ref[...] = out.astype(out_ref.dtype)


def _resident_spec(shape):
    """Full-array weight block, constant index map, single-buffered."""
    nd = len(shape)

    def idx(*_):
        return (0,) * nd

    if hasattr(pl, "Buffered"):
        try:
            return pl.BlockSpec(shape, idx, pipeline_mode=pl.Buffered(1))
        except TypeError:
            pass  # older BlockSpec signature without pipeline_mode
    return pl.BlockSpec(shape, idx)


def _pick_batch_tile(B, S, target_rows=1024):
    """Divisor of B with (bt*S) % 8 == 0 (or bt==B), preferring >=2 grid steps
    (v7x megacore) and MXU-friendly row counts near target_rows."""
    divs = [d for d in range(1, B + 1) if B % d == 0]
    valid = [d for d in divs if d == B or (d * S) % 8 == 0] or [B]
    cands = [d for d in valid if B // d >= 2] or valid

    def key(d):
        rows = d * S
        return (rows % 256 != 0, rows % 128 != 0, abs(rows - target_rows), -rows)

    return min(cands, key=key)


def attention_block(x, params, num_heads=1, *, batch_tile=None,
                    matmul_dtype=jnp.bfloat16, ffn_chunk_cols=2048,
                    attention_impl="auto", approx_recip=False,
                    vmem_limit_bytes=None, target_rows=1024):
    """x: (B, S, E) float (f32 or bf16). params: PyTorch-layout weights."""
    B, S, E = x.shape
    assert E % num_heads == 0, "embed_dim must be divisible by num_heads"
    Dh = E // num_heads
    scale = 1.0 / math.sqrt(Dh)
    f32 = jnp.float32

    # ---- Host-side weight packing: pre-transpose, fuse QKV, fold softmax
    #      scale into the Q projection (in f32, then cast), MXU dtype cast.
    qkv_scale = jnp.concatenate(
        [jnp.full((E,), scale, f32), jnp.ones((2 * E,), f32)])
    wqkv_t = (params["wqkv"].astype(f32).T * qkv_scale[None, :]).astype(matmul_dtype)
    bqkv = params["bqkv"].astype(f32).reshape(1, 3 * E) * qkv_scale[None, :]
    wo_t = params["wo"].astype(f32).T.astype(matmul_dtype)
    bo = params["bo"].astype(f32).reshape(1, E)
    w1_t = params["w1"].astype(f32).T.astype(matmul_dtype)
    b1 = params["b1"].astype(f32).reshape(1, 4 * E)
    w2_t = params["w2"].astype(f32).T.astype(matmul_dtype)
    b2 = params["b2"].astype(f32).reshape(1, E)
    ln1w = params["ln1w"].astype(f32).reshape(1, E)
    ln1b = params["ln1b"].astype(f32).reshape(1, E)
    ln2w = params["ln2w"].astype(f32).reshape(1, E)
    ln2b = params["ln2b"].astype(f32).reshape(1, E)
    weights = [wqkv_t, bqkv, wo_t, bo, ln1w, ln1b, ln2w, ln2b,
               w1_t, b1, w2_t, b2]

    # ---- Row-tile selection.
    if batch_tile is None:
        bt = _pick_batch_tile(B, S, target_rows)
    else:
        bt = int(batch_tile)
        assert B % bt == 0
        assert bt == B or (bt * S) % 8 == 0, "tile rows must be a multiple of 8"
    Rt = bt * S
    grid = (B // bt,)

    # ---- Attention implementation choice (block-diagonal dense softmax for
    #      small S; per-batch einsum otherwise).
    if attention_impl == "dense":
        dense = True
    elif attention_impl == "per_batch":
        dense = False
    else:
        dense = (S < 128) and (4 * Rt * Rt <= (4 << 20))

    # ---- FFN hidden-dim chunk (128-aligned boundaries).
    if ffn_chunk_cols is not None:
        ffn_chunk_cols = max(128, (int(ffn_chunk_cols) // 128) * 128)

    # ---- Explicit VMEM budget (conservative: weights counted double-buffered).
    io_item = jnp.dtype(x.dtype).itemsize
    weights_nbytes = sum(int(w.nbytes) for w in weights)
    est = 2 * weights_nbytes
    est += 4 * Rt * E * io_item                       # in + out tiles, x2 buffers
    est += 4 * Rt * (3 * E) * 2                       # qkv + q/k/v (f32)
    est += 4 * Rt * E * 8                             # ctx/attn/h/ff temporaries
    est += 4 * (Rt * Rt if (dense or bt == 1) else bt * S * S) * 3
    est += 4 * Rt * min(ffn_chunk_cols or 4 * E, 4 * E) * 2
    est = int(est * 1.5) + (8 << 20)
    if vmem_limit_bytes is None:
        vmem_limit_bytes = max(32 << 20, min(est, 64 << 20))

    # ---- Advisory cost estimate for XLA scheduling.
    flops = 24 * B * S * E * E + 4 * B * S * S * E
    transcendentals = B * num_heads * S * S + 4 * B * S
    bytes_accessed = 2 * B * S * E * io_item + weights_nbytes
    cost = pl.CostEstimate(flops=flops, transcendentals=transcendentals,
                           bytes_accessed=bytes_accessed)

    in_specs = [pl.BlockSpec((Rt, E), lambda i: (i, 0))]
    in_specs += [_resident_spec(w.shape) for w in weights]
    out_spec = pl.BlockSpec((Rt, E), lambda i: (i, 0))

    kernel = functools.partial(
        attention_block_kernel,
        num_heads=num_heads, seq_len=S, dense_attention=dense,
        ffn_chunk_cols=ffn_chunk_cols, approx_recip=approx_recip)

    fn = pl.pallas_call(
        kernel,
        out_shape=jax.ShapeDtypeStruct((B * S, E), x.dtype),
        grid_spec=pltpu.PrefetchScalarGridSpec(
            num_scalar_prefetch=0,
            grid=grid,
            in_specs=in_specs,
            out_specs=out_spec,
        ),
        compiler_params=pltpu.CompilerParams(
            dimension_semantics=("parallel",),
            vmem_limit_bytes=int(vmem_limit_bytes)),
        cost_estimate=cost,
    )
    out2d = fn(x.reshape(B * S, E), *weights)
    return out2d.reshape(B, S, E)


def init_params(key, embed_dim):
    """Deterministic synthetic parameters matching nn.MultiheadAttention /
    LayerNorm / Linear shapes from the PyTorch module __init__."""
    E = embed_dim
    ks = jax.random.split(key, 8)
    s = 0.1
    return {
        # nn.MultiheadAttention
        "wqkv": s * jax.random.normal(ks[0], (3 * E, E), jnp.float32),
        "bqkv": s * jax.random.normal(ks[1], (1, 3 * E), jnp.float32),
        "wo":   s * jax.random.normal(ks[2], (E, E), jnp.float32),
        "bo":   s * jax.random.normal(ks[3], (1, E), jnp.float32),
        # LayerNorms (torch default init: weight=1, bias=0)
        "ln1w": jnp.ones((1, E), jnp.float32),
        "ln1b": jnp.zeros((1, E), jnp.float32),
        "ln2w": jnp.ones((1, E), jnp.float32),
        "ln2b": jnp.zeros((1, E), jnp.float32),
        # Feed-forward
        "w1":   s * jax.random.normal(ks[4], (4 * E, E), jnp.float32),
        "b1":   s * jax.random.normal(ks[5], (1, 4 * E), jnp.float32),
        "w2":   s * jax.random.normal(ks[6], (E, 4 * E), jnp.float32),
        "b2":   s * jax.random.normal(ks[7], (1, E), jnp.float32),
    }


def attention_block_reference(x, params, num_heads=1):
    """Pure-JAX f32 reference replicating the PyTorch forward (eval mode)."""
    B, S, E = x.shape
    H, Dh = num_heads, E // num_heads
    wqkv, bqkv = params["wqkv"], params["bqkv"][0]
    q = x @ wqkv[:E].T + bqkv[:E]
    k = x @ wqkv[E:2 * E].T + bqkv[E:2 * E]
    v = x @ wqkv[2 * E:].T + bqkv[2 * E:]
    qh = q.reshape(B, S, H, Dh).transpose(0, 2, 1, 3)
    kh = k.reshape(B, S, H, Dh).transpose(0, 2, 1, 3)
    vh = v.reshape(B, S, H, Dh).transpose(0, 2, 1, 3)
    scores = jnp.einsum('bhqd,bhkd->bhqk', qh, kh) / math.sqrt(Dh)
    p = jax.nn.softmax(scores, axis=-1)
    ctx = jnp.einsum('bhqk,bhkd->bhqd', p, vh).transpose(0, 2, 1, 3).reshape(B, S, E)
    attn_out = ctx @ params["wo"].T + params["bo"][0]

    def ln(t, w, b):
        m = jnp.mean(t, -1, keepdims=True)
        var = jnp.mean((t - m) ** 2, -1, keepdims=True)
        return (t - m) * jax.lax.rsqrt(var + LN_EPS) * w[0] + b[0]

    h = ln(x + attn_out, params["ln1w"], params["ln1b"])
    ff = jnp.maximum(h @ params["w1"].T + params["b1"][0], 0.0)
    ff = ff @ params["w2"].T + params["b2"][0]
    return ln(h + ff, params["ln2w"], params["ln2b"])


if __name__ == "__main__":
    key = jax.random.PRNGKey(0)
    kx1, kx2, kp1, kp2 = jax.random.split(key, 4)

    # ---- num_heads = 1 (module default): B=2, S=8, E=32
    B, S, E = 2, 8, 32
    x1 = jax.random.normal(kx1, (B, S, E), jnp.float32)
    p1 = init_params(kp1, E)
    ref1 = attention_block_reference(x1, p1, num_heads=1)

    # Full-precision path (f32 matmuls, exact reciprocal): tight check.
    out_f32 = jax.block_until_ready(
        attention_block(x1, p1, num_heads=1, matmul_dtype=jnp.float32))
    assert out_f32.shape == (B, S, E)
    assert jnp.allclose(out_f32, ref1, rtol=2e-3, atol=2e-3), "f32 path mismatch"

    # Default fast path (bf16 MXU operands, f32 accumulation).
    out_bf16 = jax.block_until_ready(attention_block(x1, p1, num_heads=1))
    assert out_bf16.shape == (B, S, E)
    assert jnp.allclose(out_bf16, ref1, rtol=5e-2, atol=5e-2), "bf16 path mismatch"

    # ---- num_heads = 4, E=64: exercises block-diagonal dense attention
    #      (Bt=2), per-head lane slicing and the chunked FFN loop (2 chunks).
    B2, S2, E2 = 2, 8, 64
    x2 = jax.random.normal(kx2, (B2, S2, E2), jnp.float32)
    p2 = init_params(kp2, E2)
    ref2 = attention_block_reference(x2, p2, num_heads=4)

    out_mh = jax.block_until_ready(
        attention_block(x2, p2, num_heads=4, matmul_dtype=jnp.float32,
                        batch_tile=2, ffn_chunk_cols=128))
    assert out_mh.shape == (B2, S2, E2)
    assert jnp.allclose(out_mh, ref2, rtol=2e-3, atol=2e-3), "multi-head mismatch"

    # ---- Per-batch einsum attention path (the large-S fallback), forced.
    out_pb = jax.block_until_ready(
        attention_block(x2, p2, num_heads=4, matmul_dtype=jnp.float32,
                        batch_tile=2, attention_impl="per_batch"))
    assert jnp.allclose(out_pb, ref2, rtol=2e-3, atol=2e-3), "per-batch mismatch"

    print("KERNEL_OK")
</pallas_src>

<mosaic_0001>
module attributes {stable_mosaic.version = 11 : i64} {
  func.func @attention_block_kernel(%arg0: i32, %arg1: memref<8x32xf32, #tpu.memory_space<vmem>>, %arg2: memref<32x96xf32, #tpu.memory_space<vmem>>, %arg3: memref<1x96xf32, #tpu.memory_space<vmem>>, %arg4: memref<32x32xf32, #tpu.memory_space<vmem>>, %arg5: memref<1x32xf32, #tpu.memory_space<vmem>>, %arg6: memref<1x32xf32, #tpu.memory_space<vmem>>, %arg7: memref<1x32xf32, #tpu.memory_space<vmem>>, %arg8: memref<1x32xf32, #tpu.memory_space<vmem>>, %arg9: memref<1x32xf32, #tpu.memory_space<vmem>>, %arg10: memref<32x128xf32, #tpu.memory_space<vmem>>, %arg11: memref<1x128xf32, #tpu.memory_space<vmem>>, %arg12: memref<128x32xf32, #tpu.memory_space<vmem>>, %arg13: memref<1x32xf32, #tpu.memory_space<vmem>>, %arg14: memref<8x32xf32, #tpu.memory_space<vmem>>) attributes {dimension_semantics = [#tpu.dimension_semantics<parallel>], iteration_bounds = array<i64: 2>, scalar_prefetch = 0 : i64, scratch_operands = 0 : i64, tpu.core_type = #tpu.core_type<tc>, window_params = [{transform_indices = @transform_0, window_bounds = array<i64: 8, 32>}, {pipeline_mode = #tpu.pipeline_mode<synchronous>, transform_indices = @transform_1, window_bounds = array<i64: 32, 96>}, {pipeline_mode = #tpu.pipeline_mode<synchronous>, transform_indices = @transform_2, window_bounds = array<i64: 1, 96>}, {pipeline_mode = #tpu.pipeline_mode<synchronous>, transform_indices = @transform_3, window_bounds = array<i64: 32, 32>}, {pipeline_mode = #tpu.pipeline_mode<synchronous>, transform_indices = @transform_4, window_bounds = array<i64: 1, 32>}, {pipeline_mode = #tpu.pipeline_mode<synchronous>, transform_indices = @transform_5, window_bounds = array<i64: 1, 32>}, {pipeline_mode = #tpu.pipeline_mode<synchronous>, transform_indices = @transform_6, window_bounds = array<i64: 1, 32>}, {pipeline_mode = #tpu.pipeline_mode<synchronous>, transform_indices = @transform_7, window_bounds = array<i64: 1, 32>}, {pipeline_mode = #tpu.pipeline_mode<synchronous>, transform_indices = @transform_8, window_bounds = array<i64: 1, 32>}, {pipeline_mode = #tpu.pipeline_mode<synchronous>, transform_indices = @transform_9, window_bounds = array<i64: 32, 128>}, {pipeline_mode = #tpu.pipeline_mode<synchronous>, transform_indices = @transform_10, window_bounds = array<i64: 1, 128>}, {pipeline_mode = #tpu.pipeline_mode<synchronous>, transform_indices = @transform_11, window_bounds = array<i64: 128, 32>}, {pipeline_mode = #tpu.pipeline_mode<synchronous>, transform_indices = @transform_12, window_bounds = array<i64: 1, 32>}, {transform_indices = @transform_13, window_bounds = array<i64: 8, 32>}]} {
    %c0 = arith.constant 0 : index
    %c0_0 = arith.constant 0 : index
    %0 = vector.load %arg1[%c0, %c0_0] : memref<8x32xf32, #tpu.memory_space<vmem>>, vector<8x32xf32>
    %c0_1 = arith.constant 0 : index
    %c0_2 = arith.constant 0 : index
    %1 = vector.load %arg2[%c0_1, %c0_2] : memref<32x96xf32, #tpu.memory_space<vmem>>, vector<32x96xf32>
    %cst = arith.constant dense<0.000000e+00> : vector<8x96xf32>
    %2 = tpu.matmul %0, %1, %cst {dimension_numbers = #tpu.dot_dimension_numbers<[1], [0], [0], [1], [0, 0, 1, 1], [], []>} : vector<8x32xf32>, vector<32x96xf32>, vector<8x96xf32> -> vector<8x96xf32>
    %c0_3 = arith.constant 0 : index
    %c0_4 = arith.constant 0 : index
    %3 = vector.load %arg3[%c0_3, %c0_4] : memref<1x96xf32, #tpu.memory_space<vmem>>, vector<1x96xf32>
    %4 = vector.broadcast %3 : vector<1x96xf32> to vector<8x96xf32>
    %5 = arith.addf %2, %4 : vector<8x96xf32>
    %6 = vector.extract_strided_slice %5 {offsets = [0, 0], sizes = [8, 32], strides = [1, 1]} : vector<8x96xf32> to vector<8x32xf32>
    %7 = vector.extract_strided_slice %5 {offsets = [0, 32], sizes = [8, 32], strides = [1, 1]} : vector<8x96xf32> to vector<8x32xf32>
    %8 = vector.extract_strided_slice %5 {offsets = [0, 64], sizes = [8, 32], strides = [1, 1]} : vector<8x96xf32> to vector<8x32xf32>
    %9 = tpu.transpose %7, [1, 0] : vector<8x32xf32> -> vector<32x8xf32>
    %cst_5 = arith.constant dense<0.000000e+00> : vector<8x8xf32>
    %10 = tpu.matmul %6, %9, %cst_5 {dimension_numbers = #tpu.dot_dimension_numbers<[1], [0], [0], [1], [0, 0, 1, 1], [], []>} : vector<8x32xf32>, vector<32x8xf32>, vector<8x8xf32> -> vector<8x8xf32>
    %cst_6 = arith.constant dense<0xFF800000> : vector<8xf32>
    %11 = vector.multi_reduction <maximumf>, %10, %cst_6 [1] : vector<8x8xf32> to vector<8xf32>
    %12 = vector.shape_cast %11 : vector<8xf32> to vector<8x1xf32>
    %13 = vector.broadcast %12 : vector<8x1xf32> to vector<8x8xf32>
    %14 = arith.subf %10, %13 : vector<8x8xf32>
    %15 = math.exp %14 : vector<8x8xf32>
    %cst_7 = arith.constant dense<0.000000e+00> : vector<8xf32>
    %16 = vector.multi_reduction <add>, %15, %cst_7 [1] : vector<8x8xf32> to vector<8xf32>
    %17 = vector.shape_cast %16 : vector<8xf32> to vector<8x1xf32>
    %18 = tpu.reciprocal %17 : vector<8x1xf32> -> vector<8x1xf32>
    %19 = vector.broadcast %18 : vector<8x1xf32> to vector<8x8xf32>
    %20 = arith.mulf %15, %19 : vector<8x8xf32>
    %cst_8 = arith.constant dense<0.000000e+00> : vector<8x32xf32>
    %21 = tpu.matmul %20, %8, %cst_8 {dimension_numbers = #tpu.dot_dimension_numbers<[1], [0], [0], [1], [0, 0, 1, 1], [], []>} : vector<8x8xf32>, vector<8x32xf32>, vector<8x32xf32> -> vector<8x32xf32>
    %c0_9 = arith.constant 0 : index
    %c0_10 = arith.constant 0 : index
    %22 = vector.load %arg4[%c0_9, %c0_10] : memref<32x32xf32, #tpu.memory_space<vmem>>, vector<32x32xf32>
    %cst_11 = arith.constant dense<0.000000e+00> : vector<8x32xf32>
    %23 = tpu.matmul %21, %22, %cst_11 {dimension_numbers = #tpu.dot_dimension_numbers<[1], [0], [0], [1], [0, 0, 1, 1], [], []>} : vector<8x32xf32>, vector<32x32xf32>, vector<8x32xf32> -> vector<8x32xf32>
    %c0_12 = arith.constant 0 : index
    %c0_13 = arith.constant 0 : index
    %24 = vector.load %arg5[%c0_12, %c0_13] : memref<1x32xf32, #tpu.memory_space<vmem>>, vector<1x32xf32>
    %25 = vector.broadcast %24 : vector<1x32xf32> to vector<8x32xf32>
    %26 = arith.addf %23, %25 : vector<8x32xf32>
    %27 = arith.addf %0, %26 : vector<8x32xf32>
    %c0_14 = arith.constant 0 : index
    %c0_15 = arith.constant 0 : index
    %28 = vector.load %arg6[%c0_14, %c0_15] : memref<1x32xf32, #tpu.memory_space<vmem>>, vector<1x32xf32>
    %c0_16 = arith.constant 0 : index
    %c0_17 = arith.constant 0 : index
    %29 = vector.load %arg7[%c0_16, %c0_17] : memref<1x32xf32, #tpu.memory_space<vmem>>, vector<1x32xf32>
    %cst_18 = arith.constant dense<0.000000e+00> : vector<8xf32>
    %30 = vector.multi_reduction <add>, %27, %cst_18 [1] : vector<8x32xf32> to vector<8xf32>
    %31 = vector.shape_cast %30 : vector<8xf32> to vector<8x1xf32>
    %cst_19 = arith.constant 3.200000e+01 : f32
    %32 = vector.broadcast %cst_19 : f32 to vector<8x1xf32>
    %33 = arith.divf %31, %32 : vector<8x1xf32>
    %34 = vector.broadcast %33 : vector<8x1xf32> to vector<8x32xf32>
    %35 = arith.subf %27, %34 : vector<8x32xf32>
    %36 = arith.mulf %35, %35 : vector<8x32xf32>
    %cst_20 = arith.constant dense<0.000000e+00> : vector<8xf32>
    %37 = vector.multi_reduction <add>, %36, %cst_20 [1] : vector<8x32xf32> to vector<8xf32>
    %38 = vector.shape_cast %37 : vector<8xf32> to vector<8x1xf32>
    %cst_21 = arith.constant 3.200000e+01 : f32
    %39 = vector.broadcast %cst_21 : f32 to vector<8x1xf32>
    %40 = arith.divf %38, %39 : vector<8x1xf32>
    %41 = vector.broadcast %33 : vector<8x1xf32> to vector<8x32xf32>
    %42 = arith.subf %27, %41 : vector<8x32xf32>
    %cst_22 = arith.constant 9.99999974E-6 : f32
    %43 = vector.broadcast %cst_22 : f32 to vector<8x1xf32>
    %44 = arith.addf %40, %43 : vector<8x1xf32>
    %45 = math.rsqrt %44 : vector<8x1xf32>
    %46 = vector.broadcast %45 : vector<8x1xf32> to vector<8x32xf32>
    %47 = arith.mulf %42, %46 : vector<8x32xf32>
    %48 = vector.broadcast %28 : vector<1x32xf32> to vector<8x32xf32>
    %49 = arith.mulf %47, %48 : vector<8x32xf32>
    %50 = vector.broadcast %29 : vector<1x32xf32> to vector<8x32xf32>
    %51 = arith.addf %49, %50 : vector<8x32xf32>
    %cst_23 = arith.constant 0.000000e+00 : f32
    %52 = vector.broadcast %cst_23 : f32 to vector<8x32xf32>
    %c0_24 = arith.constant 0 : index
    %c0_25 = arith.constant 0 : index
    %53 = vector.load %arg10[%c0_24, %c0_25] : memref<32x128xf32, #tpu.memory_space<vmem>>, vector<32x128xf32>
    %cst_26 = arith.constant dense<0.000000e+00> : vector<8x128xf32>
    %54 = tpu.matmul %51, %53, %cst_26 {dimension_numbers = #tpu.dot_dimension_numbers<[1], [0], [0], [1], [0, 0, 1, 1], [], []>} : vector<8x32xf32>, vector<32x128xf32>, vector<8x128xf32> -> vector<8x128xf32>
    %c0_27 = arith.constant 0 : index
    %c0_28 = arith.constant 0 : index
    %55 = vector.load %arg11[%c0_27, %c0_28] : memref<1x128xf32, #tpu.memory_space<vmem>>, vector<1x128xf32>
    %56 = vector.broadcast %55 : vector<1x128xf32> to vector<8x128xf32>
    %57 = arith.addf %54, %56 : vector<8x128xf32>
    %cst_29 = arith.constant 0.000000e+00 : f32
    %58 = vector.broadcast %cst_29 : f32 to vector<8x128xf32>
    %59 = arith.maximumf %57, %58 : vector<8x128xf32>
    %c0_30 = arith.constant 0 : index
    %c0_31 = arith.constant 0 : index
    %60 = vector.load %arg12[%c0_30, %c0_31] : memref<128x32xf32, #tpu.memory_space<vmem>>, vector<128x32xf32>
    %cst_32 = arith.constant dense<0.000000e+00> : vector<8x32xf32>
    %61 = tpu.matmul %59, %60, %cst_32 {dimension_numbers = #tpu.dot_dimension_numbers<[1], [0], [0], [1], [0, 0, 1, 1], [], []>} : vector<8x128xf32>, vector<128x32xf32>, vector<8x32xf32> -> vector<8x32xf32>
    %62 = arith.addf %52, %61 : vector<8x32xf32>
    %c0_33 = arith.constant 0 : index
    %c0_34 = arith.constant 0 : index
    %63 = vector.load %arg13[%c0_33, %c0_34] : memref<1x32xf32, #tpu.memory_space<vmem>>, vector<1x32xf32>
    %64 = vector.broadcast %63 : vector<1x32xf32> to vector<8x32xf32>
    %65 = arith.addf %62, %64 : vector<8x32xf32>
    %66 = arith.addf %51, %65 : vector<8x32xf32>
    %c0_35 = arith.constant 0 : index
    %c0_36 = arith.constant 0 : index
    %67 = vector.load %arg8[%c0_35, %c0_36] : memref<1x32xf32, #tpu.memory_space<vmem>>, vector<1x32xf32>
    %c0_37 = arith.constant 0 : index
    %c0_38 = arith.constant 0 : index
    %68 = vector.load %arg9[%c0_37, %c0_38] : memref<1x32xf32, #tpu.memory_space<vmem>>, vector<1x32xf32>
    %cst_39 = arith.constant dense<0.000000e+00> : vector<8xf32>
    %69 = vector.multi_reduction <add>, %66, %cst_39 [1] : vector<8x32xf32> to vector<8xf32>
    %70 = vector.shape_cast %69 : vector<8xf32> to vector<8x1xf32>
    %cst_40 = arith.constant 3.200000e+01 : f32
    %71 = vector.broadcast %cst_40 : f32 to vector<8x1xf32>
    %72 = arith.divf %70, %71 : vector<8x1xf32>
    %73 = vector.broadcast %72 : vector<8x1xf32> to vector<8x32xf32>
    %74 = arith.subf %66, %73 : vector<8x32xf32>
    %75 = arith.mulf %74, %74 : vector<8x32xf32>
    %cst_41 = arith.constant dense<0.000000e+00> : vector<8xf32>
    %76 = vector.multi_reduction <add>, %75, %cst_41 [1] : vector<8x32xf32> to vector<8xf32>
    %77 = vector.shape_cast %76 : vector<8xf32> to vector<8x1xf32>
    %cst_42 = arith.constant 3.200000e+01 : f32
    %78 = vector.broadcast %cst_42 : f32 to vector<8x1xf32>
    %79 = arith.divf %77, %78 : vector<8x1xf32>
    %80 = vector.broadcast %72 : vector<8x1xf32> to vector<8x32xf32>
    %81 = arith.subf %66, %80 : vector<8x32xf32>
    %cst_43 = arith.constant 9.99999974E-6 : f32
    %82 = vector.broadcast %cst_43 : f32 to vector<8x1xf32>
    %83 = arith.addf %79, %82 : vector<8x1xf32>
    %84 = math.rsqrt %83 : vector<8x1xf32>
    %85 = vector.broadcast %84 : vector<8x1xf32> to vector<8x32xf32>
    %86 = arith.mulf %81, %85 : vector<8x32xf32>
    %87 = vector.broadcast %67 : vector<1x32xf32> to vector<8x32xf32>
    %88 = arith.mulf %86, %87 : vector<8x32xf32>
    %89 = vector.broadcast %68 : vector<1x32xf32> to vector<8x32xf32>
    %90 = arith.addf %88, %89 : vector<8x32xf32>
    %c0_44 = arith.constant 0 : index
    %c0_45 = arith.constant 0 : index
    %91 = vector.load %arg14[%c0_44, %c0_45] : memref<8x32xf32, #tpu.memory_space<vmem>>, vector<8x32xf32>
    tpu.vector_store %arg14[%c0_44, %c0_45], %90 {strides = array<i32>} : memref<8x32xf32, #tpu.memory_space<vmem>>, vector<8x32xf32>,
    return
  }
  func.func @transform_0(%arg0: i32) -> (i32, i32) {
    %c0_i32 = arith.constant 0 : i32
    %c0_i32_0 = arith.constant 0 : i32
    return %arg0, %c0_i32 : i32, i32
  }
  func.func @transform_1(%arg0: i32) -> (i32, i32) {
    %c0_i32 = arith.constant 0 : i32
    %c0_i32_0 = arith.constant 0 : i32
    %c0_i32_1 = arith.constant 0 : i32
    return %c0_i32, %c0_i32_0 : i32, i32
  }
  func.func @transform_2(%arg0: i32) -> (i32, i32) {
    %c0_i32 = arith.constant 0 : i32
    %c0_i32_0 = arith.constant 0 : i32
    %c0_i32_1 = arith.constant 0 : i32
    return %c0_i32, %c0_i32_0 : i32, i32
  }
  func.func @transform_3(%arg0: i32) -> (i32, i32) {
    %c0_i32 = arith.constant 0 : i32
    %c0_i32_0 = arith.constant 0 : i32
    %c0_i32_1 = arith.constant 0 : i32
    return %c0_i32, %c0_i32_0 : i32, i32
  }
  func.func @transform_4(%arg0: i32) -> (i32, i32) {
    %c0_i32 = arith.constant 0 : i32
    %c0_i32_0 = arith.constant 0 : i32
    %c0_i32_1 = arith.constant 0 : i32
    return %c0_i32, %c0_i32_0 : i32, i32
  }
  func.func @transform_5(%arg0: i32) -> (i32, i32) {
    %c0_i32 = arith.constant 0 : i32
    %c0_i32_0 = arith.constant 0 : i32
    %c0_i32_1 = arith.constant 0 : i32
    return %c0_i32, %c0_i32_0 : i32, i32
  }
  func.func @transform_6(%arg0: i32) -> (i32, i32) {
    %c0_i32 = arith.constant 0 : i32
    %c0_i32_0 = arith.constant 0 : i32
    %c0_i32_1 = arith.constant 0 : i32
    return %c0_i32, %c0_i32_0 : i32, i32
  }
  func.func @transform_7(%arg0: i32) -> (i32, i32) {
    %c0_i32 = arith.constant 0 : i32
    %c0_i32_0 = arith.constant 0 : i32
    %c0_i32_1 = arith.constant 0 : i32
    return %c0_i32, %c0_i32_0 : i32, i32
  }
  func.func @transform_8(%arg0: i32) -> (i32, i32) {
    %c0_i32 = arith.constant 0 : i32
    %c0_i32_0 = arith.constant 0 : i32
    %c0_i32_1 = arith.constant 0 : i32
    return %c0_i32, %c0_i32_0 : i32, i32
  }
  func.func @transform_9(%arg0: i32) -> (i32, i32) {
    %c0_i32 = arith.constant 0 : i32
    %c0_i32_0 = arith.constant 0 : i32
    %c0_i32_1 = arith.constant 0 : i32
    return %c0_i32, %c0_i32_0 : i32, i32
  }
  func.func @transform_10(%arg0: i32) -> (i32, i32) {
    %c0_i32 = arith.constant 0 : i32
    %c0_i32_0 = arith.constant 0 : i32
    %c0_i32_1 = arith.constant 0 : i32
    return %c0_i32, %c0_i32_0 : i32, i32
  }
  func.func @transform_11(%arg0: i32) -> (i32, i32) {
    %c0_i32 = arith.constant 0 : i32
    %c0_i32_0 = arith.constant 0 : i32
    %c0_i32_1 = arith.constant 0 : i32
    return %c0_i32, %c0_i32_0 : i32, i32
  }
  func.func @transform_12(%arg0: i32) -> (i32, i32) {
    %c0_i32 = arith.constant 0 : i32
    %c0_i32_0 = arith.constant 0 : i32
    %c0_i32_1 = arith.constant 0 : i32
    return %c0_i32, %c0_i32_0 : i32, i32
  }
  func.func @transform_13(%arg0: i32) -> (i32, i32) {
    %c0_i32 = arith.constant 0 : i32
    %c0_i32_0 = arith.constant 0 : i32
    return %arg0, %c0_i32 : i32, i32
  }
}

</mosaic_0001>

<bundles_post_ra>
// kernel: tpu_custom_call.1
= control target key start
LH: loop header
LB: loop body
LE: loop exit
PB: predicated region body
PF: predicated region fallthrough
CT: control target
= control target key end

     0   :  { %s1705_s0 = inlined_call_operand.vmem [shape: f32[16,32], index: 0, kind: input, shape index: {}]   ;;  %s1706_s1 = inlined_call_operand.vmem [shape: f32[32,96], index: 1, kind: input, shape index: {}]   ;;  %s1707_s2 = inlined_call_operand.vmem [shape: f32[1,96], index: 2, kind: input, shape index: {}]   ;;  %s1708_s3 = inlined_call_operand.vmem [shape: f32[32,32], index: 3, kind: input, shape index: {}]   ;;  %s1709_s4 = inlined_call_operand.vmem [shape: f32[1,32], index: 4, kind: input, shape index: {}]   ;;  %s1710_s5 = inlined_call_operand.vmem [shape: f32[1,32], index: 5, kind: input, shape index: {}]   ;;  %s1711_s6 = inlined_call_operand.vmem [shape: f32[1,32], index: 6, kind: input, shape index: {}]   ;;  %s1712_s7 = inlined_call_operand.vmem [shape: f32[1,32], index: 7, kind: input, shape index: {}]   ;;  %s1713_s8 = inlined_call_operand.vmem [shape: f32[1,32], index: 8, kind: input, shape index: {}]   ;;  %s1714_s9 = inlined_call_operand.vmem [shape: f32[32,128], index: 9, kind: input, shape index: {}]   ;;  %s1715_s10 = inlined_call_operand.vmem [shape: f32[1,128], index: 10, kind: input, shape index: {}]   ;;  %s1716_s11 = inlined_call_operand.vmem [shape: f32[128,32], index: 11, kind: input, shape index: {}]   ;;  %s1717_s12 = inlined_call_operand.vmem [shape: f32[1,32], index: 12, kind: input, shape index: {}]   ;;  %s1718_s13 = inlined_call_operand.hbm [shape: f32[16,32], index: 13, kind: output, shape index: {}]  }
   0x1   :  { %1719 = sst [smem:[#allocation5_spill]] %s1705_s0 }
   0x2   :  { %1720 = sst [smem:[#allocation6_spill]] %s1706_s1 }
   0x3   :  { %1721 = sst [smem:[#allocation7_spill]] %s1707_s2 }
   0x4   :  { %1722 = sst [smem:[#allocation8_spill]] %s1708_s3 }
   0x5   :  { %18 = vsyncpa [#allocation3], 0 }
   0x6   :  { %20 = vsyncpa [#allocation3 + $0x1], 0  ;;  %s1456_s25 = smov 0   ;;  %s1458_s26 = smov 0  }
   0x7   :  { %s1460_s27 = smov 0   ;;  %s1462_s28 = smov 0  }
   0x8 LB: > { %s1477_s29 = sadd.s32 4294967295, %s1378_s28   ;;  %s1084_s30 = sadd.s32 4294967294, %s1378_s28   ;;  %s1378_s28 = sphi %s1462_s28, %s1732_s28   ;;  %s1374_s27 = sphi %s1460_s27, %s1731_s27   ;;  %s1370_s26 = sphi %s1458_s26, %s1730_s26   ;;  %s1366_s25 = sphi %s1456_s25, %s1729_s25  }
   0x9   : > { %s1481_s14 = sadd.s32 1, %s1378_s28   ;;  %s311_s15 = sadd.s32 1, %s1374_s27 }
   0xa   : > { %s308_s16 = ssub.s32 %s1378_s28, %s1481_s14  ;;  %p321_p0 = scmp.ne.s32.totalorder %s1374_s27, %s1370_s26 }
   0xb   : > { %p309_p1 = scmp.eq.s32.totalorder %s308_s16, 0  ;;  %p322_p2 = scmp.eq.s32.totalorder %s1477_s29, 1 }
   0xc   : > { %p327_p3 = scmp.ne.s32.totalorder %s1370_s26, %s1366_s25  ;;  %p328_p4 = scmp.eq.s32.totalorder %s1084_s30, 1 }
   0xd   : > { %s1492_s17 = scalar_select %p309_p1, %s1374_s27, %s311_s15  }
   0xe   : > { %p1494_p5 = por %p322_p2, %p321_p0  ;;  %p1498_p6 = por %p328_p4, %p327_p3 }
   0xf   : > { %p1087_p7 = scmp.ge.s32.totalorder %s1378_s28, 1  ;;  %p389_p8 = scmp.lt.s32.totalorder %s1378_s28, 3 }
  0x11   : > { %p390_p9 = pnand %p1087_p7, %p389_p8 }
  0x12   : > { %s1725_s1 = sld [smem:[#allocation6_spill]] (!%p390_p9)  ;;  %v1380_v3 = vmov (!%p390_p9), 0.0|0.0   ;;  %vm1381_vm0 = vmmov (!%p390_p9), 0   ;;  %v1382_v6 = vmov (!%p390_p9), 0.0   ;;  %p432_p10 = scmp.lt.s32.totalorder (!%p390_p9), %s1477_s29, 1  ;;  %vm448_vm1 = vcmask (!%p390_p9), 261120  }
  0x13   : > { %393 = sbr.rel (%p390_p9) target bundleno = 2392 (0x958), region = 72  ;;  %1222 = vmatprep.subr.bf16.mxu1 (!%p390_p9), %v1380_v3  ;;  %1152 = vmatprep.mubr.msk.f32.mxu1 (!%p390_p9), %vm1381_vm0, %v1382_v6  ;;  %s1726_s0 = sld [smem:[#allocation5_spill]] (!%p390_p9)  ;;  %vm599_vm2 = vcmask (!%p390_p9), 64512   ;;  %v1095_v34 = vld [vmem:[%s1709_s4] ss:$0 sm:$0xff] (!%p390_p9)  ;;  %v803_v46 = vld [vmem:[%s1714_s9 + $0x8] sm:$0xff] (!%p390_p9) }
  0x14   : > { %1240 = vmatprep.subr.bf16.mxu0 (!%p390_p9), %v1380_v3  ;;  %1219 = vmatprep.mubr.msk.f32.mxu0 (!%p390_p9), %vm1381_vm0, %v1382_v6  ;;  %s1727_s2 = sld [smem:[#allocation7_spill]] (!%p390_p9)  ;;  %s1383_s16 = smov (!%p390_p9), 96   ;;  %v802_v45 = vld [vmem:[%s1714_s9] sm:$0xff] (!%p390_p9)  ;;  %v804_v48 = vld [vmem:[%s1714_s9 + $0x10] sm:$0xff] (!%p390_p9)  ;;  %v805_v49 = vld [vmem:[%s1714_s9 + $0x18] sm:$0xff] (!%p390_p9) }
  0x15   : > { %s1728_s3 = sld [smem:[#allocation8_spill]] (!%p390_p9)  ;;  %v1235_v47 = vpack.c.bf16 (!%p390_p9), %v803_v46, %v802_v45  ;;  %v1238_v50 = vpack.c.bf16 (!%p390_p9), %v805_v49, %v804_v48  ;;  %v887_v51 = vld [vmem:[%s1716_s11] sm:$0xff] (!%p390_p9)  ;;  %v888_v52 = vld [vmem:[%s1716_s11 + $0x8] sm:$0xff] (!%p390_p9)  ;;  %v889_v53 = vld [vmem:[%s1716_s11 + $0x10] sm:$0xff] (!%p390_p9)  ;;  %s429_s23 = sand.u32 (!%p390_p9), 1, %s1370_s26  }
  0x16   : > { %v1241_v54 = vpack.c.bf16 (!%p390_p9), %v888_v52, %v887_v51  ;;  %v890_v55 = vld [vmem:[%s1716_s11 + $0x18] sm:$0xff] (!%p390_p9)  ;;  %v891_v57 = vld [vmem:[%s1716_s11 + $0x20] sm:$0xff] (!%p390_p9)  ;;  %v892_v58 = vld [vmem:[%s1716_s11 + $0x28] sm:$0xff] (!%p390_p9) }
  0x17   : > { %v1244_v56 = vpack.c.bf16 (!%p390_p9), %v890_v55, %v889_v53  ;;  %v1247_v59 = vpack.c.bf16 (!%p390_p9), %v892_v58, %v891_v57  ;;  %v893_v60 = vld [vmem:[%s1716_s11 + $0x30] sm:$0xff] (!%p390_p9)  ;;  %v894_v61 = vld [vmem:[%s1716_s11 + $0x38] sm:$0xff] (!%p390_p9)  ;;  %v895_v63 = vld [vmem:[%s1716_s11 + $0x40] sm:$0xff] (!%p390_p9) }
  0x18   : > { %v437_v0 = vld [vmem:[%s1725_s1] sm:$0xff] (!%p390_p9)  ;;  %v438_v1 = vld [vmem:[%s1725_s1 + $0x8] sm:$0xff] (!%p390_p9)  ;;  %v439_v2 = vld [vmem:[%s1725_s1 + $0x10] sm:$0xff] (!%p390_p9)  ;;  %1242 = vmatpush3.bf16.msra.mxu0 (!%p390_p9), %v1241_v54  ;;  %v1250_v62 = vpack.c.bf16 (!%p390_p9), %v894_v61, %v893_v60 }
  0x19   : > { %v1223_v4 = vpack.c.bf16 (!%p390_p9), %v438_v1, %v437_v0  ;;  %v440_v5 = vld [vmem:[%s1725_s1 + $0x18] sm:$0xff] (!%p390_p9)  ;;  %1243 = vmatprep.subr.bf16.mxu0 (!%p390_p9), %v1380_v3  ;;  %v896_v0 = vld [vmem:[%s1716_s11 + $0x48] sm:$0xff] (!%p390_p9) }
  0x1a   : > { %v1226_v7 = vpack.c.bf16 %v440_v5, %v439_v2  ;;  %s433_s20 = scalar_select %p432_p10, %s1477_s29, 1  ;;  %v1090_v9 = vld [vmem:[%s1727_s2] ss:$0 sm:$0xff]  ;;  %v1253_v1 = vpack.c.bf16 %v896_v0, %v895_v63  ;;  %v897_v2 = vld [vmem:[%s1716_s11 + $0x50] sm:$0xff] }
  0x1b   : > { %1224 = vmatpush3.bf16.msra.mxu1 %v1223_v4  ;;  %v687_v24 = vld [vmem:[%s1728_s3] sm:$0xff]  ;;  %v688_v25 = vld [vmem:[%s1728_s3 + $0x8] sm:$0xff]  ;;  %v689_v29 = vld [vmem:[%s1728_s3 + $0x10] sm:$0xff] }
  0x1c   : > { %1225 = vmatprep.subr.bf16.mxu1 %v1380_v3  ;;  %s1089_s21 = sshll.u32 %s433_s20, 3  ;;  %s1384_s20 = smov 64   ;;  %v1229_v27 = vpack.c.bf16 %v688_v25, %v687_v24  ;;  %v690_v30 = vld [vmem:[%s1728_s3 + $0x18] sm:$0xff]  ;;  %1245 = vmatpush3.bf16.msra.mxu0 %v1244_v56  ;;  %v1101_v25 = vld [vmem:[%s1717_s12] ss:$0 sm:$0xff] }
  0x1d   : > { %s435_s24 = scalar_lea.vmem %s1726_s0, %s1089_s21  ;;  %v1232_v31 = vpack.c.bf16 %v690_v30, %v689_v29  ;;  %1246 = vmatprep.subr.bf16.mxu0 %v1380_v3  ;;  %v898_v4 = vld [vmem:[%s1716_s11 + $0x58] sm:$0xff]  ;;  %s1012_s0 = scalar_lea.sflag [#allocation3], %s429_s23 }
  0x1e   : > { %v436_v8 = vld [vmem:[%s435_s24] sm:$0xff]  ;;  %v1256_v5 = vpack.c.bf16 %v898_v4, %v897_v2  ;;  %s1088_s24 = sshll.u32 %s429_s23, 3 }
  0x1f   : > { %1227 = vmatpush3.bf16.msra.mxu1 %v1226_v7  ;;  %v900_v7 = vld [vmem:[%s1716_s11 + $0x68] sm:$0xff] }
  0x20   : > { %1155 = vmatprep.subr.mxu1 %v1382_v6  ;;  %1248 = vmatpush3.bf16.msra.mxu0 %v1247_v59 }
  0x21   : > { %1249 = vmatprep.subr.bf16.mxu0 %v1380_v3 }
  0x22   : > { %1153 = vmatmul.mubr.msk.f32.vlgmr.msra.gmra.mrb[0].mxu1 %vm448_vm1, %v436_v8 }
  0x23   : > { %1157 = vmatprep.mubr.msk.f32.mxu1 %vm1381_vm0, %v1382_v6 }
  0x24   : > { %1251 = vmatpush3.bf16.msra.mxu0 %v1250_v62 }
  0x25   : > { %1252 = vmatprep.subr.bf16.mxu0 %v1380_v3 }
  0x28   : > { %1254 = vmatpush3.bf16.msra.mxu0 %v1253_v1 }
  0x29   : > { %1255 = vmatprep.subr.bf16.mxu0 %v1380_v3 }
  0x2c   : > { %1257 = vmatpush3.bf16.msra.mxu0 %v1256_v5 }
  0x2d   : > { %1258 = vmatprep.subr.bf16.mxu0 %v1380_v3 }
  0xf5   : > { %v518_v10 = vpop.f32.mrb[0].mxu1 }
  0xf6   : > { %v519_v11 = vadd.f32 %v1090_v9, %v518_v10  ;;  %v1154_v12 = vpop.f32.mrb[1].mxu1 }
  0xf8   : > { %523 = vrot.lane.b32.xlu0 %v519_v11, %s1383_s16  ;;  %s1105_s16 = sshll.u32 %s1477_s29, 7  ;;  %s1385_s29 = smov [#allocation2]  }
  0xf9   : > { %s1662_s3 = scalar_lea.hbm %s1718_s13, %s1105_s16 }
 0x16a   : > { %v524_v13 = vpop.permute.xlu0 %523 }
 0x16b   : > { %1156 = vmatpush3.xpose.msk.msra.mxu1 %vm448_vm1, %v524_v13  ;;  %v1097_v13 = vld [vmem:[%s1710_s5] ss:$0 sm:$0xff] }
 0x16c   : > { %1160 = vmatprep.subr.mxu1 %v1382_v6 }
 0x16e   : > { %1158 = vmatmul.mubr.msk.f32.vlgmr.msra.gmra.mrb[2].mxu1 %vm448_vm1, %v519_v11 }
 0x16f   : > { %1162 = vmatprep.mubr.msk.f32.mxu1 %vm1381_vm0, %v1382_v6 }
 0x241   : > { %v595_v14 = vpop.f32.mrb[2].mxu1 }
 0x242   : > { %v1159_v15 = vpop.f32.mrb[3].mxu1  ;;  %v600_v16 = vsel %vm599_vm2, %v595_v14, -inf }
 0x243   : > { %601 = vmax.xlane.f32.xlu0 %v600_v16  ;;  %v1098_v15 = vld [vmem:[%s1711_s6] ss:$0 sm:$0xff] }
 0x2d0   : > { %v602_v17 = vpop.xlane.xlu0 %601 }
 0x2d1   : > { %v603_v18 = vsub.f32 %v595_v14, %v602_v17 }
 0x2d3   : > { %v604_v19 = vmul.f32 1.442695, %v603_v18  ;;  %v902_v18 = vld [vmem:[%s1716_s11 + $0x78] sm:$0xff] }
 0x2d5   : > { %1308 = vpow2.f32 %v604_v19 }
 0x2df   : > { %v1309_v20 = vpop.eup %1308 }
 0x2e0   : > { %v606_v21 = vsel %vm599_vm2, %v1309_v20, 0.0 }
 0x2e1   : > { %607 = vadd.xlane.f32.xlu1 %v606_v21 }
 0x2f2   : > { %611 = vrot.lane.b32.xlu1 %v519_v11, %s1384_s20  ;;  %s431_s20 = scalar_lea.vmem [#allocation2], %s1088_s24  ;;  %s1320_s24 = sshll.u32 %s1385_s29, 4  ;;  %s1321_s24 = int_to_ptr.vmem [resolvable:$false] %s1320_s24 }
 0x2f3   : > { %s1025_s21 = sshll.u32 %s431_s20, 4  ;;  %s1322_s30 = scalar_lea.vmem %s1321_s24, 256  ;;  %s1664_s21 = int_to_ptr.vmem [resolvable:$true] %s1025_s21 }
 0x2f4   : > { %s1316_s1 = scalar_lea.vmem %s1664_s21, 128  ;;  %p1323_p0 = scmp.lt.s32.totalorder %s1664_s21, %s1321_s24 }
 0x2f5   : > { %p1317_p11 = scmp.ne.s32.totalorder %s1664_s21, %s1316_s1  ;;  %p1324_p1 = scmp.lt.s32.totalorder %s1322_s30, %s1316_s1 }
 0x2f7   : > { %p1318_p12 = pnand %p1317_p11, %p1494_p5  ;;  %p1325_p2 = por %p1324_p1, %p1323_p0 }
 0x2f9   : > { %p1319_p13 = pneg %p1318_p12 }
 0x2fb   : > { %p1326_p3 = pnand %p1325_p2, %p1319_p13 }
 0x36e   : > { %v608_v22 = vpop.xlane.xlu1 %607 }
 0x36f   : > { %1310 = vrcp.f32 %v608_v22 }
 0x372   : > { %v612_v23 = vpop.permute.xlu1 %611 }
 0x373   : > { %1161 = vmatpush3.msra.mxu1 %v612_v23 }
 0x374   : > { %1228 = vmatprep.subr.bf16.mxu1 %v1380_v3 }
 0x379   : > { %v1311_v26 = vpop.eup %1310 }
 0x37a   : > { %v610_v28 = vmul.f32 %v1311_v26, %v1309_v20  ;;  %v1099_v20 = vld [vmem:[%s1715_s10] ss:$0 sm:$0xff] }
 0x37c   : > { %1163 = vmatmul.mubr.msk.f32.vlgmr.msra.gmra.mrb[4].mxu1 %vm599_vm2, %v610_v28 }
 0x37d   : > { %1230 = vmatpush3.bf16.msra.mxu1 %v1229_v27  ;;  %1173 = vmatprep.mubr.msk.f32.mxu1 %vm1381_vm0, %v1382_v6 }
 0x37e   : > { %1231 = vmatprep.subr.bf16.mxu1 %v1380_v3 }
 0x381   : > { %1233 = vmatpush3.bf16.msra.mxu1 %v1232_v31 }
 0x382   : > { %1234 = vmatprep.subr.bf16.mxu1 %v1380_v3 }
 0x44f   : > { %v683_v32 = vpop.f32.mrb[4].mxu1 }
 0x450   : > { %v1164_v33 = vpop.f32.mrb[5].mxu1  ;;  %1174 = vmatmul.mubr.msk.f32.vlgmr.msra.gmra.mrb[6].mxu1 %vm448_vm1, %v683_v32 }
 0x451   : > { %1184 = vmatprep.mubr.msk.f32.mxu1 %vm1381_vm0, %v1382_v6  ;;  %1236 = vmatpush3.bf16.msra.mxu1 %v1235_v47  ;;  %v899_v6 = vld [vmem:[%s1716_s11 + $0x60] sm:$0xff] }
 0x452   : > { %1237 = vmatprep.subr.bf16.mxu1 %v1380_v3 }
 0x455   : > { %1239 = vmatpush3.bf16.msra.mxu1 %v1238_v50 }
 0x523   : > { %v767_v35 = vpop.f32.mrb[6].mxu1 }
 0x524   : > { %v768_v36 = vadd.f32 %v1095_v34, %v767_v35  ;;  %v1175_v37 = vpop.f32.mrb[7].mxu1 }
 0x526   : > { %v771_v38 = vadd.f32 %v768_v36, %v436_v8  ;;  %v1259_v8 = vpack.c.bf16 %v900_v7, %v899_v6 }
 0x528   : > { %v774_v39 = vsel %vm448_vm1, %v771_v38, 0.0  ;;  %1260 = vmatpush3.bf16.msra.mxu0 %v1259_v8 }
 0x529   : > { %775 = vadd.xlane.f32.xlu1 %v774_v39  ;;  %1261 = vmatprep.subr.bf16.mxu0 %v1380_v3  ;;  %v901_v3 = vld [vmem:[%s1716_s11 + $0x70] sm:$0xff] }
 0x52a   : > { %v1262_v19 = vpack.c.bf16 %v902_v18, %v901_v3 }
 0x52c   : > { %1263 = vmatpush3.bf16.msra.mxu0 %v1262_v19 }
 0x5b6   : > { %v776_v40 = vpop.xlane.xlu1 %775 }
 0x5b7   : > { %v778_v41 = vmul.f32 0.03125, %v776_v40  ;;  %v1102_v40 = vld [vmem:[%s1712_s7] ss:$0 sm:$0xff] }
 0x5b9   : > { %v779_v42 = vsub.f32 %v771_v38, %v778_v41 }
 0x5bb   : > { %v780_v43 = vmul.f32 %v779_v42, %v779_v42 }
 0x5bd   : > { %v781_v44 = vsel %vm448_vm1, %v780_v43, 0.0 }
 0x5be   : > { %782 = vadd.xlane.f32.xlu0 %v781_v44 }
 0x64b   : > { %v783_v9 = vpop.xlane.xlu0 %782 }
 0x64c   : > { %v784_v10 = vmul.f32 0.03125, %v783_v9 }
 0x64e   : > { %v785_v11 = vadd.f32 1e-05, %v784_v10 }
 0x650   : > { %1312 = vrsqrt.f32 %v785_v11 }
 0x65a   : > { %v1313_v12 = vpop.eup %1312 }
 0x65b   : > { %v787_v14 = vmul.f32 %v1313_v12, %v779_v42  ;;  %v1103_v42 = vld [vmem:[%s1713_s8] ss:$0 sm:$0xff] }
 0x65d   : > { %v794_v16 = vmul.f32 %v1097_v13, %v787_v14 }
 0x65f   : > { %v801_v17 = vadd.f32 %v1098_v15, %v794_v16 }
 0x661   : > { %1185 = vmatmul.mubr.msk.f32.vlgmr.msra.gmra.mrb[8].mxu1 %vm448_vm1, %v801_v17 }
 0x734   : > { %v882_v21 = vpop.f32.mrb[8].mxu1 }
 0x735   : > { %v883_v22 = vadd.f32 %v1099_v20, %v882_v21  ;;  %v1186_v23 = vpop.f32.mrb[9].mxu1 }
 0x737   : > { %v886_v24 = vmax.f32 %v883_v22, 0.0 }
 0x739   : > { %1220 = vmatmul.mubr.f32.vlgmr.msra.gmra.mrb[0].mxu0 %v886_v24 }
 0x80c   : > { %v976_v26 = vpop.f32.mrb[0].mxu0 }
 0x80d   : > { %v977_v27 = vadd.f32 %v1101_v25, %v976_v26  ;;  %v1221_v28 = vpop.f32.mrb[1].mxu0 }
 0x80f   : > { %v980_v29 = vadd.f32 %v977_v27, %v801_v17 }
 0x811   : > { %v983_v30 = vsel %vm448_vm1, %v980_v29, 0.0 }
 0x812   : > { %984 = vadd.xlane.f32.xlu0 %v983_v30 }
 0x89f   : > { %v985_v31 = vpop.xlane.xlu0 %984 }
 0x8a0   : > { %v986_v32 = vmul.f32 0.03125, %v985_v31 }
 0x8a2   : > { %v987_v33 = vsub.f32 %v980_v29, %v986_v32 }
 0x8a4   : > { %v988_v34 = vmul.f32 %v987_v33, %v987_v33 }
 0x8a6   : > { %v989_v35 = vsel %vm448_vm1, %v988_v34, 0.0 }
 0x8a7   : > { %990 = vadd.xlane.f32.xlu0 %v989_v35 }
 0x934   : > { %v991_v36 = vpop.xlane.xlu0 %990 }
 0x935   : > { %v992_v37 = vmul.f32 0.03125, %v991_v36 }
 0x937   : > { %v993_v38 = vadd.f32 1e-05, %v992_v37 }
 0x939   : > { %1314 = vrsqrt.f32 %v993_v38 }
 0x943   : > { %v1315_v39 = vpop.eup %1314 }
 0x944   : > { %v995_v41 = vmul.f32 %v1315_v39, %v987_v33 }
 0x946   : > { %v1002_v43 = vmul.f32 %v1102_v40, %v995_v41 }
 0x948   : > { %v1009_v44 = vadd.f32 %v1103_v42, %v1002_v43 }
 0x94a   : > { %1010 = vst.msk [vmem:[%s431_s20] sm:$0xff] %vm448_vm1, %v1009_v44 }
 0x94b   : > { %1329 = shalt.err (!%p1326_p3)
}
 0x94c   : > { %s1330_s2 = scalar_lea.hbm %s1662_s3, 128  ;;  %s1334_s16 = scalar_lea.hbm %s1718_s13, 256 }
 0x94d   : > { %p1331_p4 = scmp.ne.s32.totalorder %s1662_s3, %s1330_s2  ;;  %p1335_p9 = scmp.lt.u32.totalorder %s1662_s3, %s1718_s13 }
 0x94e   : > { %p1336_p10 = scmp.lt.u32.totalorder %s1334_s16, %s1330_s2  ;;  %p1338_p12 = scmp.lt.u32.totalorder %s1330_s2, %s1662_s3 }
 0x94f   : > { %p1332_p7 = pnand %p1331_p4, %p1494_p5 }
 0x950   : > { %p1337_p11 = por %p1336_p10, %p1335_p9 }
 0x951   : > { %p1333_p8 = pneg %p1332_p7 }
 0x952   : > { %p1339_p13 = por %p1338_p12, %p1337_p11 }
 0x954   : > { %p1340_p0 = pnand %p1339_p13, %p1333_p8 }
 0x956   : > { %1343 = shalt.err (!%p1340_p0)
}
 0x957   : > { %1264 = dma.vmem_to_hbm [thread:$0]  (%p1494_p5), %s1664_s21, 128, %s1662_s3, %s1012_s0  }
 0x958 PF: > { %p1270_p1 = scmp.ge.s32.totalorder %s1378_s28, 2  ;;  %s1037_s1 = sand.u32 1, %s1366_s25  }
 0x959   : > { %s1038_s29 = scalar_lea.sflag [#allocation3], %s1037_s1 }
 0x95a   : > { %p1267_p2 = pnand %p1270_p1, %p1498_p6 }
 0x95c   : > { %1361 = dma.done.wait (!%p1267_p2), %s1038_s29, 128  }
 0x95d   : > { %1363 = vsyncadd (!%p1267_p2), %s1038_s29, 4294967168  ;;  %p23_p3 = scmp.ge.s32.totalorder %s1481_s14, 4   ;;  %s1729_s25 = smov %s1370_s26 }
 0x95e   : > { %s1730_s26 = smov %s1374_s27  ;;  %s1731_s27 = smov %s1492_s17 }
 0x95f   : > { %s1732_s28 = smov %s1481_s14  ;;  %25 = sbr.rel (!%p23_p3) target bundleno = 8 (0x8), region = 107 }
 0x966   :  { %1043 = vsyncpa [#allocation3], 1 }
 0x967   :  { %1045 = vsyncpa [#allocation3 + $0x1], 1 }

</bundles_post_ra>
